<compile_context>
chip_gen: v7x
topology: tpu7x:2x2x1
jax: 0.10.0
libtpu: 0.0.40
codegen_flags: <defaults>
</compile_context>

<pallas_src>
import functools

import jax
import jax.numpy as jnp
from jax.experimental import pallas as pl
from jax.experimental.pallas import tpu as pltpu


LN_EPS = 1e-5  # torch.nn.LayerNorm default


def _gelu_exact(x):
    # PyTorch nn.GELU() default: 0.5 * x * (1 + erf(x / sqrt(2)))  (f32 math)
    inv_sqrt2 = jnp.float32(0.7071067811865476)
    return 0.5 * x * (1.0 + jax.lax.erf(x * inv_sqrt2))


def token_prompt_kernel(x_ref, wp_ref, w_ref, p_ref, o_ref, *, num_layers):
    # x_ref:  [tm, H]      batch tile of the BERT CLS representation, bf16
    # wp_ref: [H, D]       out_proj weight (transposed vs. torch), bf16
    # w_ref:  [L, D, D]    refiner Linear weights (transposed), bf16
    # p_ref:  [3L+1, D]    packed f32 params:
    #                        row 0            : out_proj bias
    #                        rows 1   .. L    : LayerNorm gamma per layer
    #                        rows 1+L .. 2L   : LayerNorm beta per layer
    #                        rows 1+2L.. 3L   : refiner Linear bias per layer
    L = num_layers

    # out_proj: bf16 operands into the MXU, f32 accumulate, f32 bias add.
    t = jnp.dot(x_ref[...], wp_ref[...], preferred_element_type=jnp.float32)
    t = t + p_ref[0:1, :]

    # PromptTokenRefiner: L x (LayerNorm -> Linear -> GELU)
    for l in range(L):
        gamma = p_ref[1 + l: 2 + l, :]
        beta = p_ref[1 + L + l: 2 + L + l, :]
        bias = p_ref[1 + 2 * L + l: 2 + 2 * L + l, :]

        # Two-pass LayerNorm (matches torch.nn.LayerNorm numerics).
        mu = jnp.mean(t, axis=-1, keepdims=True)
        xc = t - mu
        var = jnp.mean(xc * xc, axis=-1, keepdims=True)
        tn = xc * jax.lax.rsqrt(var + LN_EPS)
        tn = tn * gamma + beta

        # Linear: narrow only the dot operands to bf16; accumulate f32.
        h = jnp.dot(tn.astype(jnp.bfloat16), w_ref[l],
                    preferred_element_type=jnp.float32)
        h = h + bias
        t = _gelu_exact(h)

    o_ref[...] = t.astype(o_ref.dtype)


def token_prompt_encoder(cls_repr, params, *, batch_tile=None):
    """cls_repr: [B, H] float32  ->  refined prompt tokens [B, 1, D] float32."""
    B, H = cls_repr.shape
    D = params["wp"].shape[1]
    L = params["w"].shape[0]

    # Batch tiling: 16-aligned (bf16 vreg packing), one tile for small batches,
    # capped at 256 (native row count of the v6e/v7x 2x256^2 MXU).
    if batch_tile is None:
        batch_tile = min(256, -(-B // 16) * 16)
    tm = batch_tile
    Bp = -(-B // tm) * tm
    num_tiles = Bp // tm

    # Cast activations to bf16 once in the wrapper (halves activation DMA) and
    # pad the batch to the tile size.
    x = cls_repr.astype(jnp.bfloat16)
    if Bp != B:
        x = jnp.pad(x, ((0, Bp - B), (0, 0)))

    # Pack the small f32 parameter vectors into a single [3L+1, D] slab.
    packed = jnp.concatenate(
        [params["bp"], params["ln_gamma"], params["ln_beta"], params["b"]],
        axis=0)
    P = packed.shape[0]

    kernel = functools.partial(token_prompt_kernel, num_layers=L)

    # Constant-index operands: single-buffered (they never change block index).
    const_buf = pl.Buffered(1)
    grid_spec = pltpu.PrefetchScalarGridSpec(
        num_scalar_prefetch=0,
        grid=(num_tiles,),
        in_specs=[
            pl.BlockSpec((tm, H), lambda i: (i, 0)),            # x: tiled batch
            pl.BlockSpec((H, D), lambda i: (0, 0),
                         pipeline_mode=const_buf),              # wp (bf16)
            pl.BlockSpec((L, D, D), lambda i: (0, 0, 0),
                         pipeline_mode=const_buf),              # refiner weights
            pl.BlockSpec((P, D), lambda i: (0, 0),
                         pipeline_mode=const_buf),              # packed f32 params
        ],
        out_specs=pl.BlockSpec((tm, D), lambda i: (i, 0)),
    )

    # Only shard the batch axis across TensorCores when each core gets real work.
    dims = ("parallel",) if num_tiles >= 2 else ("arbitrary",)

    # Explicit VMEM budget: single-buffered weights + params, double-buffered
    # activation tiles, plus headroom.
    weight_bytes = params["wp"].size * 2 + params["w"].size * 2     # bf16
    param_bytes = packed.size * 4                                   # f32
    act_bytes = 2 * (tm * H * 2) + 2 * (tm * D * 4)                 # in/out tiles
    vmem_limit = min(int(1.5 * (weight_bytes + param_bytes + act_bytes))
                     + (4 << 20), 100 << 20)

    # Advisory cost hint: 2 flops/MAC; erf per refined element + rsqrt per row/layer.
    flops = 2 * Bp * (H * D + L * D * D)
    transcendentals = Bp * D * L + Bp * L
    bytes_accessed = (weight_bytes + param_bytes
                      + Bp * H * 2          # bf16 activations in
                      + Bp * D * 4)         # f32 output
    cost = pl.CostEstimate(flops=flops, transcendentals=transcendentals,
                           bytes_accessed=bytes_accessed)

    out2d = pl.pallas_call(
        kernel,
        out_shape=jax.ShapeDtypeStruct((Bp, D), jnp.float32),
        grid_spec=grid_spec,
        compiler_params=pltpu.CompilerParams(
            dimension_semantics=dims,
            vmem_limit_bytes=vmem_limit),
        cost_estimate=cost,
    )(x, params["wp"], params["w"], packed)

    # drop batch padding, then .unsqueeze(1)  => [B, 1, D]  (pure glue)
    return out2d[:B, None, :]


def token_prompt_reference(cls_repr, params):
    """Pure-JAX reference mirroring the kernel math (bf16 dot operands)."""
    t = jnp.dot(cls_repr.astype(jnp.bfloat16), params["wp"],
                preferred_element_type=jnp.float32) + params["bp"]
    L = params["w"].shape[0]
    for l in range(L):
        mu = jnp.mean(t, axis=-1, keepdims=True)
        var = jnp.mean(jnp.square(t - mu), axis=-1, keepdims=True)
        tn = (t - mu) * jax.lax.rsqrt(var + LN_EPS)
        tn = tn * params["ln_gamma"][l] + params["ln_beta"][l]
        h = jnp.dot(tn.astype(jnp.bfloat16), params["w"][l],
                    preferred_element_type=jnp.float32) + params["b"][l]
        t = _gelu_exact(h)
    return t[:, None, :]


def init_params(key, hidden_size, out_dim, refine_depth):
    """Deterministic synthetic parameters matching the module's shapes."""
    ks = jax.random.split(key, 2 + 2 * refine_depth)
    # out_proj: Linear(hidden_size, out_dim) -- stored as [H, D] (transposed).
    # Matmul weights stored in bf16 (halves DMA, native MXU path); everything
    # that touches the VPU/EUP stays f32.
    # NOTE: bf16 weights are a deliberate approximation vs the f32 torch module.
    wp = (jax.random.normal(ks[0], (hidden_size, out_dim), jnp.float32)
          * 0.02).astype(jnp.bfloat16)
    bp = jax.random.normal(ks[1], (1, out_dim), jnp.float32) * 0.02
    ln_gamma = jnp.ones((refine_depth, out_dim), jnp.float32)
    ln_beta = jnp.zeros((refine_depth, out_dim), jnp.float32)
    w = jnp.stack([
        (jax.random.normal(ks[2 + 2 * i], (out_dim, out_dim), jnp.float32)
         * 0.02).astype(jnp.bfloat16)
        for i in range(refine_depth)
    ])
    b = jnp.stack([
        jax.random.normal(ks[3 + 2 * i], (out_dim,), jnp.float32) * 0.02
        for i in range(refine_depth)
    ])
    return {"wp": wp, "bp": bp, "ln_gamma": ln_gamma, "ln_beta": ln_beta,
            "w": w, "b": b}


if __name__ == "__main__":
    # Small, TPU-tile-friendly shapes: B=16 "texts", BERT hidden=128, out_dim=256.
    # Default batch_tile -> tm=16, grid=(1,): the whole batch in one grid step.
    B, H, D, depth = 16, 128, 256, 3

    key = jax.random.PRNGKey(0)
    k_x, k_p = jax.random.split(key)

    # Synthetic BERT CLS output (stands in for the frozen text encoder).
    cls_repr = jax.random.normal(k_x, (B, H), jnp.float32)
    params = init_params(k_p, H, D, depth)

    out = token_prompt_encoder(cls_repr, params)
    out = jax.block_until_ready(out)

    assert out.shape == (B, 1, D), out.shape
    assert jnp.all(jnp.isfinite(out))

    # Cross-check against the pure-JAX reference (same bf16 dot operands).
    ref = jax.block_until_ready(token_prompt_reference(cls_repr, params))
    assert jnp.allclose(out, ref, rtol=5e-3, atol=5e-3), (
        float(jnp.max(jnp.abs(out - ref))))

    print("KERNEL_OK")
</pallas_src>

<mosaic_0001>
module attributes {stable_mosaic.version = 11 : i64} {
  func.func @token_prompt_kernel(%arg0: i32, %arg1: memref<16x128xbf16, #tpu.memory_space<vmem>>, %arg2: memref<128x256xbf16, #tpu.memory_space<vmem>>, %arg3: memref<3x256x256xbf16, #tpu.memory_space<vmem>>, %arg4: memref<10x256xf32, #tpu.memory_space<vmem>>, %arg5: memref<16x256xf32, #tpu.memory_space<vmem>>) attributes {dimension_semantics = [#tpu.dimension_semantics<arbitrary>], iteration_bounds = array<i64: 1>, scalar_prefetch = 0 : i64, scratch_operands = 0 : i64, tpu.core_type = #tpu.core_type<tc>, window_params = [{transform_indices = @transform_0, window_bounds = array<i64: 16, 128>}, {pipeline_mode = #tpu.pipeline_mode<synchronous>, transform_indices = @transform_1, window_bounds = array<i64: 128, 256>}, {pipeline_mode = #tpu.pipeline_mode<synchronous>, transform_indices = @transform_2, window_bounds = array<i64: 3, 256, 256>}, {pipeline_mode = #tpu.pipeline_mode<synchronous>, transform_indices = @transform_3, window_bounds = array<i64: 10, 256>}, {transform_indices = @transform_4, window_bounds = array<i64: 16, 256>}]} {
    %c0 = arith.constant 0 : index
    %c0_0 = arith.constant 0 : index
    %0 = vector.load %arg1[%c0, %c0_0] : memref<16x128xbf16, #tpu.memory_space<vmem>>, vector<16x128xbf16>
    %c0_1 = arith.constant 0 : index
    %c0_2 = arith.constant 0 : index
    %1 = vector.load %arg2[%c0_1, %c0_2] : memref<128x256xbf16, #tpu.memory_space<vmem>>, vector<128x256xbf16>
    %cst = arith.constant dense<0.000000e+00> : vector<16x256xf32>
    %2 = tpu.matmul %0, %1, %cst {dimension_numbers = #tpu.dot_dimension_numbers<[1], [0], [0], [1], [0, 0, 1, 1], [], []>} : vector<16x128xbf16>, vector<128x256xbf16>, vector<16x256xf32> -> vector<16x256xf32>
    %c0_3 = arith.constant 0 : index
    %c0_4 = arith.constant 0 : index
    %3 = vector.load %arg4[%c0_3, %c0_4] : memref<10x256xf32, #tpu.memory_space<vmem>>, vector<1x256xf32>
    %4 = vector.broadcast %3 : vector<1x256xf32> to vector<16x256xf32>
    %5 = arith.addf %2, %4 : vector<16x256xf32>
    %c1 = arith.constant 1 : index
    %c0_5 = arith.constant 0 : index
    %6 = vector.load %arg4[%c1, %c0_5] : memref<10x256xf32, #tpu.memory_space<vmem>>, vector<1x256xf32>
    %c4 = arith.constant 4 : index
    %c0_6 = arith.constant 0 : index
    %7 = vector.load %arg4[%c4, %c0_6] : memref<10x256xf32, #tpu.memory_space<vmem>>, vector<1x256xf32>
    %c7 = arith.constant 7 : index
    %c0_7 = arith.constant 0 : index
    %8 = vector.load %arg4[%c7, %c0_7] : memref<10x256xf32, #tpu.memory_space<vmem>>, vector<1x256xf32>
    %cst_8 = arith.constant dense<0.000000e+00> : vector<16xf32>
    %9 = vector.multi_reduction <add>, %5, %cst_8 [1] : vector<16x256xf32> to vector<16xf32>
    %10 = vector.shape_cast %9 : vector<16xf32> to vector<16x1xf32>
    %cst_9 = arith.constant 2.560000e+02 : f32
    %11 = vector.broadcast %cst_9 : f32 to vector<16x1xf32>
    %12 = arith.divf %10, %11 : vector<16x1xf32>
    %13 = vector.broadcast %12 : vector<16x1xf32> to vector<16x256xf32>
    %14 = arith.subf %5, %13 : vector<16x256xf32>
    %15 = arith.mulf %14, %14 : vector<16x256xf32>
    %cst_10 = arith.constant dense<0.000000e+00> : vector<16xf32>
    %16 = vector.multi_reduction <add>, %15, %cst_10 [1] : vector<16x256xf32> to vector<16xf32>
    %17 = vector.shape_cast %16 : vector<16xf32> to vector<16x1xf32>
    %cst_11 = arith.constant 2.560000e+02 : f32
    %18 = vector.broadcast %cst_11 : f32 to vector<16x1xf32>
    %19 = arith.divf %17, %18 : vector<16x1xf32>
    %cst_12 = arith.constant 9.99999974E-6 : f32
    %20 = vector.broadcast %cst_12 : f32 to vector<16x1xf32>
    %21 = arith.addf %19, %20 : vector<16x1xf32>
    %22 = math.rsqrt %21 : vector<16x1xf32>
    %23 = vector.broadcast %22 : vector<16x1xf32> to vector<16x256xf32>
    %24 = arith.mulf %14, %23 : vector<16x256xf32>
    %25 = vector.broadcast %6 : vector<1x256xf32> to vector<16x256xf32>
    %26 = arith.mulf %24, %25 : vector<16x256xf32>
    %27 = vector.broadcast %7 : vector<1x256xf32> to vector<16x256xf32>
    %28 = arith.addf %26, %27 : vector<16x256xf32>
    %29 = arith.truncf %28 : vector<16x256xf32> to vector<16x256xbf16>
    %c0_13 = arith.constant 0 : index
    %c0_14 = arith.constant 0 : index
    %c0_15 = arith.constant 0 : index
    %30 = vector.load %arg3[%c0_13, %c0_14, %c0_15] : memref<3x256x256xbf16, #tpu.memory_space<vmem>>, vector<1x256x256xbf16>
    %31 = vector.shape_cast %30 : vector<1x256x256xbf16> to vector<256x256xbf16>
    %cst_16 = arith.constant dense<0.000000e+00> : vector<16x256xf32>
    %32 = tpu.matmul %29, %31, %cst_16 {dimension_numbers = #tpu.dot_dimension_numbers<[1], [0], [0], [1], [0, 0, 1, 1], [], []>} : vector<16x256xbf16>, vector<256x256xbf16>, vector<16x256xf32> -> vector<16x256xf32>
    %33 = vector.broadcast %8 : vector<1x256xf32> to vector<16x256xf32>
    %34 = arith.addf %32, %33 : vector<16x256xf32>
    %cst_17 = arith.constant 5.000000e-01 : f32
    %35 = vector.broadcast %cst_17 : f32 to vector<16x256xf32>
    %36 = arith.mulf %35, %34 : vector<16x256xf32>
    %cst_18 = arith.constant 0.707106769 : f32
    %37 = vector.broadcast %cst_18 : f32 to vector<16x256xf32>
    %38 = arith.mulf %34, %37 : vector<16x256xf32>
    %39 = math.erf %38 : vector<16x256xf32>
    %cst_19 = arith.constant 1.000000e+00 : f32
    %40 = vector.broadcast %cst_19 : f32 to vector<16x256xf32>
    %41 = arith.addf %40, %39 : vector<16x256xf32>
    %42 = arith.mulf %36, %41 : vector<16x256xf32>
    %c2 = arith.constant 2 : index
    %c0_20 = arith.constant 0 : index
    %43 = vector.load %arg4[%c2, %c0_20] : memref<10x256xf32, #tpu.memory_space<vmem>>, vector<1x256xf32>
    %c5 = arith.constant 5 : index
    %c0_21 = arith.constant 0 : index
    %44 = vector.load %arg4[%c5, %c0_21] : memref<10x256xf32, #tpu.memory_space<vmem>>, vector<1x256xf32>
    %c8 = arith.constant 8 : index
    %c0_22 = arith.constant 0 : index
    %45 = vector.load %arg4[%c8, %c0_22] : memref<10x256xf32, #tpu.memory_space<vmem>>, vector<1x256xf32>
    %cst_23 = arith.constant dense<0.000000e+00> : vector<16xf32>
    %46 = vector.multi_reduction <add>, %42, %cst_23 [1] : vector<16x256xf32> to vector<16xf32>
    %47 = vector.shape_cast %46 : vector<16xf32> to vector<16x1xf32>
    %cst_24 = arith.constant 2.560000e+02 : f32
    %48 = vector.broadcast %cst_24 : f32 to vector<16x1xf32>
    %49 = arith.divf %47, %48 : vector<16x1xf32>
    %50 = vector.broadcast %49 : vector<16x1xf32> to vector<16x256xf32>
    %51 = arith.subf %42, %50 : vector<16x256xf32>
    %52 = arith.mulf %51, %51 : vector<16x256xf32>
    %cst_25 = arith.constant dense<0.000000e+00> : vector<16xf32>
    %53 = vector.multi_reduction <add>, %52, %cst_25 [1] : vector<16x256xf32> to vector<16xf32>
    %54 = vector.shape_cast %53 : vector<16xf32> to vector<16x1xf32>
    %cst_26 = arith.constant 2.560000e+02 : f32
    %55 = vector.broadcast %cst_26 : f32 to vector<16x1xf32>
    %56 = arith.divf %54, %55 : vector<16x1xf32>
    %cst_27 = arith.constant 9.99999974E-6 : f32
    %57 = vector.broadcast %cst_27 : f32 to vector<16x1xf32>
    %58 = arith.addf %56, %57 : vector<16x1xf32>
    %59 = math.rsqrt %58 : vector<16x1xf32>
    %60 = vector.broadcast %59 : vector<16x1xf32> to vector<16x256xf32>
    %61 = arith.mulf %51, %60 : vector<16x256xf32>
    %62 = vector.broadcast %43 : vector<1x256xf32> to vector<16x256xf32>
    %63 = arith.mulf %61, %62 : vector<16x256xf32>
    %64 = vector.broadcast %44 : vector<1x256xf32> to vector<16x256xf32>
    %65 = arith.addf %63, %64 : vector<16x256xf32>
    %66 = arith.truncf %65 : vector<16x256xf32> to vector<16x256xbf16>
    %c1_28 = arith.constant 1 : index
    %c0_29 = arith.constant 0 : index
    %c0_30 = arith.constant 0 : index
    %67 = vector.load %arg3[%c1_28, %c0_29, %c0_30] : memref<3x256x256xbf16, #tpu.memory_space<vmem>>, vector<1x256x256xbf16>
    %68 = vector.shape_cast %67 : vector<1x256x256xbf16> to vector<256x256xbf16>
    %cst_31 = arith.constant dense<0.000000e+00> : vector<16x256xf32>
    %69 = tpu.matmul %66, %68, %cst_31 {dimension_numbers = #tpu.dot_dimension_numbers<[1], [0], [0], [1], [0, 0, 1, 1], [], []>} : vector<16x256xbf16>, vector<256x256xbf16>, vector<16x256xf32> -> vector<16x256xf32>
    %70 = vector.broadcast %45 : vector<1x256xf32> to vector<16x256xf32>
    %71 = arith.addf %69, %70 : vector<16x256xf32>
    %cst_32 = arith.constant 5.000000e-01 : f32
    %72 = vector.broadcast %cst_32 : f32 to vector<16x256xf32>
    %73 = arith.mulf %72, %71 : vector<16x256xf32>
    %cst_33 = arith.constant 0.707106769 : f32
    %74 = vector.broadcast %cst_33 : f32 to vector<16x256xf32>
    %75 = arith.mulf %71, %74 : vector<16x256xf32>
    %76 = math.erf %75 : vector<16x256xf32>
    %cst_34 = arith.constant 1.000000e+00 : f32
    %77 = vector.broadcast %cst_34 : f32 to vector<16x256xf32>
    %78 = arith.addf %77, %76 : vector<16x256xf32>
    %79 = arith.mulf %73, %78 : vector<16x256xf32>
    %c3 = arith.constant 3 : index
    %c0_35 = arith.constant 0 : index
    %80 = vector.load %arg4[%c3, %c0_35] : memref<10x256xf32, #tpu.memory_space<vmem>>, vector<1x256xf32>
    %c6 = arith.constant 6 : index
    %c0_36 = arith.constant 0 : index
    %81 = vector.load %arg4[%c6, %c0_36] : memref<10x256xf32, #tpu.memory_space<vmem>>, vector<1x256xf32>
    %c9 = arith.constant 9 : index
    %c0_37 = arith.constant 0 : index
    %82 = vector.load %arg4[%c9, %c0_37] : memref<10x256xf32, #tpu.memory_space<vmem>>, vector<1x256xf32>
    %cst_38 = arith.constant dense<0.000000e+00> : vector<16xf32>
    %83 = vector.multi_reduction <add>, %79, %cst_38 [1] : vector<16x256xf32> to vector<16xf32>
    %84 = vector.shape_cast %83 : vector<16xf32> to vector<16x1xf32>
    %cst_39 = arith.constant 2.560000e+02 : f32
    %85 = vector.broadcast %cst_39 : f32 to vector<16x1xf32>
    %86 = arith.divf %84, %85 : vector<16x1xf32>
    %87 = vector.broadcast %86 : vector<16x1xf32> to vector<16x256xf32>
    %88 = arith.subf %79, %87 : vector<16x256xf32>
    %89 = arith.mulf %88, %88 : vector<16x256xf32>
    %cst_40 = arith.constant dense<0.000000e+00> : vector<16xf32>
    %90 = vector.multi_reduction <add>, %89, %cst_40 [1] : vector<16x256xf32> to vector<16xf32>
    %91 = vector.shape_cast %90 : vector<16xf32> to vector<16x1xf32>
    %cst_41 = arith.constant 2.560000e+02 : f32
    %92 = vector.broadcast %cst_41 : f32 to vector<16x1xf32>
    %93 = arith.divf %91, %92 : vector<16x1xf32>
    %cst_42 = arith.constant 9.99999974E-6 : f32
    %94 = vector.broadcast %cst_42 : f32 to vector<16x1xf32>
    %95 = arith.addf %93, %94 : vector<16x1xf32>
    %96 = math.rsqrt %95 : vector<16x1xf32>
    %97 = vector.broadcast %96 : vector<16x1xf32> to vector<16x256xf32>
    %98 = arith.mulf %88, %97 : vector<16x256xf32>
    %99 = vector.broadcast %80 : vector<1x256xf32> to vector<16x256xf32>
    %100 = arith.mulf %98, %99 : vector<16x256xf32>
    %101 = vector.broadcast %81 : vector<1x256xf32> to vector<16x256xf32>
    %102 = arith.addf %100, %101 : vector<16x256xf32>
    %103 = arith.truncf %102 : vector<16x256xf32> to vector<16x256xbf16>
    %c2_43 = arith.constant 2 : index
    %c0_44 = arith.constant 0 : index
    %c0_45 = arith.constant 0 : index
    %104 = vector.load %arg3[%c2_43, %c0_44, %c0_45] : memref<3x256x256xbf16, #tpu.memory_space<vmem>>, vector<1x256x256xbf16>
    %105 = vector.shape_cast %104 : vector<1x256x256xbf16> to vector<256x256xbf16>
    %cst_46 = arith.constant dense<0.000000e+00> : vector<16x256xf32>
    %106 = tpu.matmul %103, %105, %cst_46 {dimension_numbers = #tpu.dot_dimension_numbers<[1], [0], [0], [1], [0, 0, 1, 1], [], []>} : vector<16x256xbf16>, vector<256x256xbf16>, vector<16x256xf32> -> vector<16x256xf32>
    %107 = vector.broadcast %82 : vector<1x256xf32> to vector<16x256xf32>
    %108 = arith.addf %106, %107 : vector<16x256xf32>
    %cst_47 = arith.constant 5.000000e-01 : f32
    %109 = vector.broadcast %cst_47 : f32 to vector<16x256xf32>
    %110 = arith.mulf %109, %108 : vector<16x256xf32>
    %cst_48 = arith.constant 0.707106769 : f32
    %111 = vector.broadcast %cst_48 : f32 to vector<16x256xf32>
    %112 = arith.mulf %108, %111 : vector<16x256xf32>
    %113 = math.erf %112 : vector<16x256xf32>
    %cst_49 = arith.constant 1.000000e+00 : f32
    %114 = vector.broadcast %cst_49 : f32 to vector<16x256xf32>
    %115 = arith.addf %114, %113 : vector<16x256xf32>
    %116 = arith.mulf %110, %115 : vector<16x256xf32>
    %c0_50 = arith.constant 0 : index
    %c0_51 = arith.constant 0 : index
    %117 = vector.load %arg5[%c0_50, %c0_51] : memref<16x256xf32, #tpu.memory_space<vmem>>, vector<16x256xf32>
    tpu.vector_store %arg5[%c0_50, %c0_51], %116 {strides = array<i32>} : memref<16x256xf32, #tpu.memory_space<vmem>>, vector<16x256xf32>,
    return
  }
  func.func @transform_0(%arg0: i32) -> (i32, i32) {
    %c0_i32 = arith.constant 0 : i32
    %c0_i32_0 = arith.constant 0 : i32
    return %arg0, %c0_i32 : i32, i32
  }
  func.func @transform_1(%arg0: i32) -> (i32, i32) {
    %c0_i32 = arith.constant 0 : i32
    %c0_i32_0 = arith.constant 0 : i32
    %c0_i32_1 = arith.constant 0 : i32
    return %c0_i32, %c0_i32_0 : i32, i32
  }
  func.func @transform_2(%arg0: i32) -> (i32, i32, i32) {
    %c0_i32 = arith.constant 0 : i32
    %c0_i32_0 = arith.constant 0 : i32
    %c0_i32_1 = arith.constant 0 : i32
    %c0_i32_2 = arith.constant 0 : i32
    return %c0_i32, %c0_i32_0, %c0_i32_1 : i32, i32, i32
  }
  func.func @transform_3(%arg0: i32) -> (i32, i32) {
    %c0_i32 = arith.constant 0 : i32
    %c0_i32_0 = arith.constant 0 : i32
    %c0_i32_1 = arith.constant 0 : i32
    return %c0_i32, %c0_i32_0 : i32, i32
  }
  func.func @transform_4(%arg0: i32) -> (i32, i32) {
    %c0_i32 = arith.constant 0 : i32
    %c0_i32_0 = arith.constant 0 : i32
    return %arg0, %c0_i32 : i32, i32
  }
}

</mosaic_0001>

<bundles_post_ra>
// kernel: tpu_custom_call.1
= control target key start
LH: loop header
LB: loop body
LE: loop exit
PB: predicated region body
PF: predicated region fallthrough
CT: control target
= control target key end

     0   :  { %9 = vsyncpa [#allocation3], 0  ;;  %s1855_s0 = inlined_call_operand.hbm [shape: bf16[16,128], index: 0, kind: input, shape index: {}]   ;;  %s1856_s1 = inlined_call_operand.hbm [shape: bf16[128,256], index: 1, kind: input, shape index: {}]   ;;  %s1857_s2 = inlined_call_operand.hbm [shape: bf16[3,256,256], index: 2, kind: input, shape index: {}]   ;;  %s1858_s3 = inlined_call_operand.hbm [shape: f32[10,256], index: 3, kind: input, shape index: {}]   ;;  %s1859_s4 = inlined_call_operand.hbm [shape: f32[16,256], index: 4, kind: output, shape index: {}]  }
   0x1   :  { %10 = vsyncpa [#allocation6], 0 }
   0x2   :  { %11 = vsyncpa [#allocation9], 0 }
   0x3   :  { %12 = vsyncpa [#allocation4], 0  ;;  %s1715_s15 = smov [#allocation5]   ;;  %s1597_s19 = scalar_lea.hbm %s1856_s1, 2048 }
   0x4   :  { %s30_s16 = sshll.u32 %s1715_s15, 4  ;;  %p1598_p0 = scmp.ne.s32.totalorder %s1856_s1, %s1597_s19  ;;  %s31_s16 = int_to_ptr.vmem [resolvable:$true] %s30_s16 }
   0x5   :  { %p1601_p1 = scmp.lt.u32.totalorder %s1597_s19, %s1856_s1 }
   0x7   :  { %p1603_p2 = pnand %p1601_p1, %p1598_p0 }
   0x9   :  { %1606 = shalt.err (!%p1603_p2)
}
   0xa   :  { %s1607_s24 = scalar_lea.vmem %s31_s16, 2048  ;;  %p1612_p4 = scmp.lt.s32.totalorder %s31_s16, %s31_s16 }
   0xb   :  { %p1608_p3 = scmp.ne.s32.totalorder %s31_s16, %s1607_s24  ;;  %p1613_p5 = scmp.lt.s32.totalorder %s1607_s24, %s1607_s24 }
   0xd   :  { %p1614_p6 = por %p1613_p5, %p1612_p4 }
   0xf   :  { %p1615_p7 = pnand %p1614_p6, %p1608_p3 }
  0x11   :  { %1618 = shalt.err (!%p1615_p7)
}
  0x12   :  { %s1716_s25 = smov 128   ;;  %s1717_s26 = smov 8  }
  0x13   :  { %36 = dma.hbm_to_vmem [thread:$0]  %s1856_s1, 2048, %s31_s16, [#allocation6], %s1716_s25, %s1716_s25, %s1717_s26  }
  0x14   :  { %s1718_s29 = smov [#allocation2]   ;;  %s1619_s7 = scalar_lea.hbm %s1855_s0, 128 }
  0x15   :  { %s18_s30 = sshll.u32 %s1718_s29, 4  ;;  %p1620_p8 = scmp.ne.s32.totalorder %s1855_s0, %s1619_s7  ;;  %s19_s30 = int_to_ptr.vmem [resolvable:$true] %s18_s30 }
  0x16   :  { %p1623_p9 = scmp.lt.u32.totalorder %s1619_s7, %s1855_s0 }
  0x18   :  { %p1625_p10 = pnand %p1623_p9, %p1620_p8 }
  0x1a   :  { %1628 = shalt.err (!%p1625_p10)
}
  0x1b   :  { %s1629_s12 = scalar_lea.vmem %s19_s30, 128  ;;  %p1634_p12 = scmp.lt.s32.totalorder %s19_s30, %s19_s30 }
  0x1c   :  { %p1630_p11 = scmp.ne.s32.totalorder %s19_s30, %s1629_s12  ;;  %p1635_p13 = scmp.lt.s32.totalorder %s1629_s12, %s1629_s12 }
  0x1e   :  { %p1636_p0 = por %p1635_p13, %p1634_p12 }
  0x20   :  { %p1637_p1 = pnand %p1636_p0, %p1630_p11 }
  0x22   :  { %1640 = shalt.err (!%p1637_p1)
}
  0x23   :  { %s1719_s1 = smov 64   ;;  %s1720_s13 = smov 4  }
  0x24   :  { %24 = dma.hbm_to_vmem [thread:$0]  %s1855_s0, 128, %s19_s30, [#allocation3], %s1719_s1, %s1719_s1, %s1720_s13  }
  0x25   :  { %s1721_s16 = smov [#allocation7]   ;;  %s1722_s18 = smov [#allocation8]  }
  0x26   :  { %s42_s17 = sshll.u32 %s1721_s16, 4  ;;  %s54_s19 = sshll.u32 %s1722_s18, 4  ;;  %s43_s17 = int_to_ptr.vmem [resolvable:$true] %s42_s17  ;;  %s1779_s19 = int_to_ptr.vmem [resolvable:$true] %s54_s19 }
  0x27   :  { %s1641_s22 = scalar_lea.hbm %s1857_s2, 12288 }
  0x28   :  { %p1642_p2 = scmp.ne.s32.totalorder %s1857_s2, %s1641_s22  ;;  %p1645_p3 = scmp.lt.u32.totalorder %s1641_s22, %s1857_s2 }
  0x2a   :  { %p1647_p4 = pnand %p1645_p3, %p1642_p2 }
  0x2c   :  { %1650 = shalt.err (!%p1647_p4)
}
  0x2d   :  { %s1651_s0 = scalar_lea.vmem %s43_s17, 12288  ;;  %p1656_p6 = scmp.lt.s32.totalorder %s43_s17, %s43_s17 }
  0x2e   :  { %p1652_p5 = scmp.ne.s32.totalorder %s43_s17, %s1651_s0  ;;  %p1657_p7 = scmp.lt.s32.totalorder %s1651_s0, %s1651_s0 }
  0x30   :  { %p1658_p8 = por %p1657_p7, %p1656_p6 }
  0x32   :  { %p1659_p9 = pnand %p1658_p8, %p1652_p5 }
  0x34   :  { %1662 = shalt.err (!%p1659_p9)
}
  0x35   :  { %48 = dma.hbm_to_vmem [thread:$0]  %s1857_s2, 12288, %s43_s17, [#allocation6], %s1716_s25, %s1716_s25, %s1717_s26  }
  0x36   :  { %s1663_s7 = scalar_lea.hbm %s1858_s3, 512 }
  0x37   :  { %p1664_p10 = scmp.ne.s32.totalorder %s1858_s3, %s1663_s7  ;;  %p1667_p11 = scmp.lt.u32.totalorder %s1663_s7, %s1858_s3 }
  0x39   :  { %p1669_p12 = pnand %p1667_p11, %p1664_p10 }
  0x3b   :  { %1672 = shalt.err (!%p1669_p12)
}
  0x3c   :  { %s1673_s12 = scalar_lea.vmem %s1779_s19, 512  ;;  %p1678_p0 = scmp.lt.s32.totalorder %s1779_s19, %s1779_s19 }
  0x3d   :  { %p1674_p13 = scmp.ne.s32.totalorder %s1779_s19, %s1673_s12  ;;  %p1679_p1 = scmp.lt.s32.totalorder %s1673_s12, %s1673_s12 }
  0x3f   :  { %p1680_p2 = por %p1679_p1, %p1678_p0 }
  0x41   :  { %p1681_p3 = pnand %p1680_p2, %p1674_p13 }
  0x43   :  { %1684 = shalt.err (!%p1681_p3)
}
  0x44   :  { %s1723_s2 = smov 256   ;;  %s1724_s25 = smov 16  }
  0x45   :  { %60 = dma.hbm_to_vmem [thread:$0]  %s1858_s3, 512, %s1779_s19, [#allocation9], %s1723_s2, %s1723_s2, %s1724_s25  }
  0x46   :  { %1707 = dma.done.wait [#allocation3], 128  }
  0x47   :  { %1708 = vsyncadd [#allocation3], 4294967168 }
  0x48   :  { %1709 = dma.done.wait [#allocation6], 14336  }
  0x49   :  { %1710 = vsyncadd [#allocation6], 4294952960 }
  0x4a   :  { %1711 = dma.done.wait [#allocation9], 512  }
  0x4b   :  { %1712 = vsyncadd [#allocation9], 4294966784  ;;  %v1725_v0 = vmov 0   ;;  %v1392_v1 = vld [vmem:[#allocation5 + $0x4] ss:$8 sps:$4 sm:$0xff]   ;;  %v1416_v17 = vld [vmem:[#allocation2] sm:$0xff]   ;;  %v94_v18 = vlaneseq }
  0x4c   :  { %222 = vmatprep.mubr.bf16.mxu0 %v1725_v0  ;;  %v1394_v2 = vld [vmem:[#allocation5] ss:$8 sps:$4 sm:$0xff]   ;;  %190 = vmatprep.subr.bf16.mxu0 %v1392_v1  ;;  %v1395_v3 = vld [vmem:[#allocation5 + $0x14] ss:$8 sps:$4 sm:$0xff]   ;;  %v1397_v4 = vld [vmem:[#allocation5 + $0x10] ss:$8 sps:$4 sm:$0xff]  }
  0x4d   :  { %191 = vmatpush1.bf16.msra.mxu0 %v1394_v2  ;;  %v1398_v5 = vld [vmem:[#allocation5 + $0x24] ss:$8 sps:$4 sm:$0xff]   ;;  %v1400_v6 = vld [vmem:[#allocation5 + $0x20] ss:$8 sps:$4 sm:$0xff]   ;;  %v1401_v7 = vld [vmem:[#allocation5 + $0x34] ss:$8 sps:$4 sm:$0xff]  }
  0x4e   :  { %192 = vmatprep.subr.bf16.mxu0 %v1395_v3  ;;  %v1403_v8 = vld [vmem:[#allocation5 + $0x30] ss:$8 sps:$4 sm:$0xff]   ;;  %v1404_v9 = vld [vmem:[#allocation5 + $0x44] ss:$8 sps:$4 sm:$0xff]   ;;  %v1406_v10 = vld [vmem:[#allocation5 + $0x40] ss:$8 sps:$4 sm:$0xff]  }
  0x4f   :  { %v1407_v11 = vld [vmem:[#allocation5 + $0x54] ss:$8 sps:$4 sm:$0xff]   ;;  %v1409_v12 = vld [vmem:[#allocation5 + $0x50] ss:$8 sps:$4 sm:$0xff]   ;;  %v1410_v13 = vld [vmem:[#allocation5 + $0x64] ss:$8 sps:$4 sm:$0xff]  }
  0x50   :  { %v1412_v14 = vld [vmem:[#allocation5 + $0x60] ss:$8 sps:$4 sm:$0xff]   ;;  %v1413_v15 = vld [vmem:[#allocation5 + $0x74] ss:$8 sps:$4 sm:$0xff]   ;;  %v1415_v16 = vld [vmem:[#allocation5 + $0x70] ss:$8 sps:$4 sm:$0xff]  }
  0x51   :  { %193 = vmatpush1.bf16.msra.mxu0 %v1397_v4  ;;  %v95_v19 = vshrl.u32 %v94_v18, 7  ;;  %v92_v21 = vld [vmem:[#allocation8] ss:$8 sm:$0x3]  ;;  %v1417_v35 = vld [vmem:[#allocation7 + $0x4] ss:$8 sps:$4 sm:$0xff]  }
  0x52   :  { %194 = vmatprep.subr.bf16.mxu0 %v1398_v5  ;;  %v1419_v36 = vld [vmem:[#allocation7] ss:$8 sps:$4 sm:$0xff]   ;;  %v1420_v37 = vld [vmem:[#allocation7 + $0x14] ss:$8 sps:$4 sm:$0xff]   ;;  %507 = vmatprep.subr.bf16.mxu1 %v1417_v35  ;;  %v1422_v38 = vld [vmem:[#allocation7 + $0x10] ss:$8 sps:$4 sm:$0xff]  }
  0x53   :  { %v1816_v20 = vsub.s32 0, %v95_v19  ;;  %v1818_v22 = vsub.s32 1, %v95_v19  ;;  %508 = vmatpush1.bf16.msra.mxu1 %v1419_v36  ;;  %v1423_v39 = vld [vmem:[#allocation7 + $0x24] ss:$8 sps:$4 sm:$0xff]   ;;  %v1425_v40 = vld [vmem:[#allocation7 + $0x20] ss:$8 sps:$4 sm:$0xff]  }
  0x54   :  { %509 = vmatprep.subr.bf16.mxu1 %v1420_v37  ;;  %v1426_v41 = vld [vmem:[#allocation7 + $0x34] ss:$8 sps:$4 sm:$0xff]   ;;  %v1428_v42 = vld [vmem:[#allocation7 + $0x30] ss:$8 sps:$4 sm:$0xff]   ;;  %v1429_v43 = vld [vmem:[#allocation7 + $0x44] ss:$8 sps:$4 sm:$0xff]  }
  0x55   :  { %195 = vmatpush1.bf16.msra.mxu0 %v1400_v6  ;;  %v97_v23 = vrot.slane %v92_v21, %v1816_v20  ;;  %v101_v24 = vrot.slane %v92_v21, %v1818_v22  ;;  %v1431_v44 = vld [vmem:[#allocation7 + $0x40] ss:$8 sps:$4 sm:$0xff]   ;;  %v1432_v45 = vld [vmem:[#allocation7 + $0x54] ss:$8 sps:$4 sm:$0xff]   ;;  %v1434_v46 = vld [vmem:[#allocation7 + $0x50] ss:$8 sps:$4 sm:$0xff]  }
  0x56   :  { %196 = vmatprep.subr.bf16.mxu0 %v1401_v7  ;;  %v1435_v47 = vld [vmem:[#allocation7 + $0x64] ss:$8 sps:$4 sm:$0xff]   ;;  %v1437_v48 = vld [vmem:[#allocation7 + $0x60] ss:$8 sps:$4 sm:$0xff]   ;;  %v1438_v49 = vld [vmem:[#allocation7 + $0x74] ss:$8 sps:$4 sm:$0xff]  }
  0x57   :  { %510 = vmatpush1.bf16.msra.mxu1 %v1422_v38  ;;  %v1440_v50 = vld [vmem:[#allocation7 + $0x70] ss:$8 sps:$4 sm:$0xff]   ;;  %v1441_v51 = vld [vmem:[#allocation7 + $0x84] ss:$8 sps:$4 sm:$0xff]   ;;  %v1443_v52 = vld [vmem:[#allocation7 + $0x80] ss:$8 sps:$4 sm:$0xff]  }
  0x58   :  { %511 = vmatprep.subr.bf16.mxu1 %v1423_v39  ;;  %v1444_v3 = vld [vmem:[#allocation7 + $0x94] ss:$8 sps:$4 sm:$0xff]   ;;  %v1446_v4 = vld [vmem:[#allocation7 + $0x90] ss:$8 sps:$4 sm:$0xff]   ;;  %v1447_v5 = vld [vmem:[#allocation7 + $0xa4] ss:$8 sps:$4 sm:$0xff]  }
  0x59   :  { %197 = vmatpush1.bf16.msra.mxu0 %v1403_v8  ;;  %v1449_v6 = vld [vmem:[#allocation7 + $0xa0] ss:$8 sps:$4 sm:$0xff]   ;;  %v1450_v7 = vld [vmem:[#allocation7 + $0xb4] ss:$8 sps:$4 sm:$0xff]   ;;  %v1452_v8 = vld [vmem:[#allocation7 + $0xb0] ss:$8 sps:$4 sm:$0xff]  }
  0x5a   :  { %198 = vmatprep.subr.bf16.mxu0 %v1404_v9  ;;  %v1453_v9 = vld [vmem:[#allocation7 + $0xc4] ss:$8 sps:$4 sm:$0xff]   ;;  %s1726_s3 = smov [#allocation10]  }
  0x5b   :  { %512 = vmatpush1.bf16.msra.mxu1 %v1425_v40  ;;  %s1253_s13 = sshll.u32 %s1726_s3, 4  ;;  %s1254_s13 = int_to_ptr.vmem [resolvable:$true] %s1253_s13 }
  0x5c   :  { %513 = vmatprep.subr.bf16.mxu1 %v1426_v41  ;;  %s1685_s14 = scalar_lea.vmem %s1254_s13, 512  ;;  %p1690_p5 = scmp.lt.s32.totalorder %s1254_s13, %s1254_s13 }
  0x5d   :  { %199 = vmatpush1.bf16.msra.mxu0 %v1406_v10  ;;  %v1455_v10 = vld [vmem:[#allocation7 + $0xc0] ss:$8 sps:$4 sm:$0xff]   ;;  %p1686_p4 = scmp.ne.s32.totalorder %s1254_s13, %s1685_s14  ;;  %p1691_p6 = scmp.lt.s32.totalorder %s1685_s14, %s1685_s14 }
  0x5e   :  { %200 = vmatprep.subr.bf16.mxu0 %v1407_v11  ;;  %v1456_v11 = vld [vmem:[#allocation7 + $0xd4] ss:$8 sps:$4 sm:$0xff]  }
  0x5f   :  { %514 = vmatpush1.bf16.msra.mxu1 %v1428_v42  ;;  %p1692_p7 = por %p1691_p6, %p1690_p5 }
  0x60   :  { %515 = vmatprep.subr.bf16.mxu1 %v1429_v43 }
  0x61   :  { %201 = vmatpush1.bf16.msra.mxu0 %v1409_v12  ;;  %v1458_v12 = vld [vmem:[#allocation7 + $0xd0] ss:$8 sps:$4 sm:$0xff]   ;;  %p1693_p8 = pnand %p1692_p7, %p1686_p4 }
  0x62   :  { %202 = vmatprep.subr.bf16.mxu0 %v1410_v13  ;;  %v1459_v13 = vld [vmem:[#allocation7 + $0xe4] ss:$8 sps:$4 sm:$0xff]  }
  0x63   :  { %516 = vmatpush1.bf16.msra.mxu1 %v1431_v44 }
  0x64   :  { %517 = vmatprep.subr.bf16.mxu1 %v1432_v45 }
  0x65   :  { %203 = vmatpush1.bf16.msra.mxu0 %v1412_v14  ;;  %v1461_v14 = vld [vmem:[#allocation7 + $0xe0] ss:$8 sps:$4 sm:$0xff]  }
  0x66   :  { %204 = vmatprep.subr.bf16.mxu0 %v1413_v15  ;;  %v1462_v15 = vld [vmem:[#allocation7 + $0xf4] ss:$8 sps:$4 sm:$0xff]  }
  0x67   :  { %518 = vmatpush1.bf16.msra.mxu1 %v1434_v46 }
  0x68   :  { %519 = vmatprep.subr.bf16.mxu1 %v1435_v47  ;;  %v238_v47 = vld [vmem:[#allocation8 + $0x7] ss:$8 sm:$0x3] }
  0x69   :  { %205 = vmatpush1.bf16.msra.mxu0 %v1415_v16  ;;  %v1464_v16 = vld [vmem:[#allocation7 + $0xf0] ss:$8 sps:$4 sm:$0xff]  }
  0x6b   :  { %520 = vmatpush1.bf16.msra.mxu1 %v1437_v48  ;;  %v340_v48 = vrot.slane %v238_v47, %v1816_v20 }
  0x6c   :  { %223 = vmatmul.mubr.bf16.vlgmr.msra.gmra.mrb[0].mxu0 %v1416_v17  ;;  %521 = vmatprep.subr.bf16.mxu1 %v1438_v49  ;;  %v344_v49 = vrot.slane %v238_v47, %v1818_v22 }
  0x6f   :  { %522 = vmatpush1.bf16.msra.mxu1 %v1440_v50 }
  0x70   :  { %523 = vmatprep.subr.bf16.mxu1 %v1441_v51 }
  0x73   :  { %524 = vmatpush1.bf16.msra.mxu1 %v1443_v52 }
  0x74   :  { %525 = vmatprep.subr.bf16.mxu1 %v1444_v3 }
  0x77   :  { %526 = vmatpush1.bf16.msra.mxu1 %v1446_v4 }
  0x78   :  { %527 = vmatprep.subr.bf16.mxu1 %v1447_v5 }
  0x7b   :  { %528 = vmatpush1.bf16.msra.mxu1 %v1449_v6 }
  0x7c   :  { %529 = vmatprep.subr.bf16.mxu1 %v1450_v7 }
  0x7f   :  { %530 = vmatpush1.bf16.msra.mxu1 %v1452_v8 }
  0x80   :  { %531 = vmatprep.subr.bf16.mxu1 %v1453_v9 }
  0x83   :  { %532 = vmatpush1.bf16.msra.mxu1 %v1455_v10 }
  0x84   :  { %533 = vmatprep.subr.bf16.mxu1 %v1456_v11 }
  0x87   :  { %534 = vmatpush1.bf16.msra.mxu1 %v1458_v12 }
  0x88   :  { %535 = vmatprep.subr.bf16.mxu1 %v1459_v13 }
  0x8b   :  { %536 = vmatpush1.bf16.msra.mxu1 %v1461_v14 }
  0x8c   :  { %537 = vmatprep.subr.bf16.mxu1 %v1462_v15 }
  0x8f   :  { %538 = vmatpush1.bf16.msra.mxu1 %v1464_v16  ;;  %v1465_v16 = vld [vmem:[#allocation7 + $0x100] ss:$8 sps:$4 sm:$0xff]  }
 0x13f   :  { %v224_v25 = vpop.f32.mrb[0].mxu0 }
 0x140   :  { %v225_v26 = vadd.f32 %v224_v25, %v97_v23  ;;  %v226_v27 = vpop.f32.mrb[1].mxu0  ;;  %v234_v25 = vld [vmem:[#allocation8 + $0x1] ss:$8 sm:$0x3] }
 0x141   :  { %v227_v28 = vadd.f32 %v226_v27, %v101_v24  ;;  %v228_v29 = vpop.f32.mrb[2].mxu0  ;;  %v236_v27 = vld [vmem:[#allocation8 + $0x4] ss:$8 sm:$0x3] }
 0x142   :  { %v230_v30 = vpop.f32.mrb[3].mxu0  ;;  %v229_v31 = vadd.f32 %v228_v29, %v97_v23  ;;  %v276_v29 = vrot.slane %v234_v25, %v1816_v20 }
 0x143   :  { %v231_v32 = vadd.f32 %v230_v30, %v101_v24  ;;  %v239_v33 = vadd.f32 %v227_v28, %v225_v26  ;;  %v280_v30 = vrot.slane %v234_v25, %v1818_v22  ;;  %v1474_v25 = vld [vmem:[#allocation7 + $0x130] ss:$8 sps:$4 sm:$0xff]  }
 0x145   :  { %240 = vadd.xlane.f32.xlu0 %v239_v33  ;;  %v242_v34 = vadd.f32 %v231_v32, %v229_v31  ;;  %v291_v33 = vrot.slane %v236_v27, %v1816_v20 }
 0x149   :  { %243 = vadd.xlane.f32.xlu0 %v242_v34  ;;  %v295_v34 = vrot.slane %v236_v27, %v1818_v22  ;;  %v1477_v27 = vld [vmem:[#allocation7 + $0x140] ss:$8 sps:$4 sm:$0xff]  }
 0x1d2   :  { %v241_v53 = vpop.xlane.xlu0 %240 }
 0x1d3   :  { %v246_v54 = vmul.f32 0.00390625, %v241_v53 }
 0x1d5   :  { %v248_v55 = vsub.f32 %v225_v26, %v246_v54  ;;  %v249_v56 = vsub.f32 %v227_v28, %v246_v54 }
 0x1d6   :  { %v244_v57 = vpop.xlane.xlu0 %243 }
 0x1d7   :  { %v247_v58 = vmul.f32 0.00390625, %v244_v57  ;;  %v252_v59 = vmul.f32 %v248_v55, %v248_v55  ;;  %v253_v60 = vmul.f32 %v249_v56, %v249_v56 }
 0x1d9   :  { %v250_v61 = vsub.f32 %v229_v31, %v247_v58  ;;  %v251_v62 = vsub.f32 %v231_v32, %v247_v58  ;;  %v256_v63 = vadd.f32 %v253_v60, %v252_v59 }
 0x1db   :  { %257 = vadd.xlane.f32.xlu1 %v256_v63  ;;  %v254_v0 = vmul.f32 %v250_v61, %v250_v61  ;;  %v255_v1 = vmul.f32 %v251_v62, %v251_v62 }
 0x1dd   :  { %v259_v2 = vadd.f32 %v255_v1, %v254_v0 }
 0x1df   :  { %260 = vadd.xlane.f32.xlu1 %v259_v2 }
 0x268   :  { %v258_v17 = vpop.xlane.xlu1 %257 }
 0x269   :  { %v262_v18 = vmul.f32 0.00390625, %v258_v17  ;;  %v1467_v17 = vld [vmem:[#allocation7 + $0x104] ss:$8 sps:$4 sm:$0xff]  }
 0x26a   :  { %844 = vmatprep.subr.bf16.mxu0 %v1467_v17 }
 0x26b   :  { %v264_v19 = vadd.f32 1e-05, %v262_v18  ;;  %v1470_v18 = vld [vmem:[#allocation7 + $0x114] ss:$8 sps:$4 sm:$0xff]   ;;  %845 = vmatpush1.bf16.msra.mxu0 %v1465_v16 }
 0x26c   :  { %v261_v21 = vpop.xlane.xlu1 %260  ;;  %846 = vmatprep.subr.bf16.mxu0 %v1470_v18 }
 0x26d   :  { %1561 = vrsqrt.f32 %v264_v19  ;;  %v263_v23 = vmul.f32 0.00390625, %v261_v21  ;;  %v1468_v19 = vld [vmem:[#allocation7 + $0x110] ss:$8 sps:$4 sm:$0xff]   ;;  %v1473_v21 = vld [vmem:[#allocation7 + $0x124] ss:$8 sps:$4 sm:$0xff]  }
 0x26f   :  { %v265_v24 = vadd.f32 1e-05, %v263_v23  ;;  %847 = vmatpush1.bf16.msra.mxu0 %v1468_v19  ;;  %v1471_v23 = vld [vmem:[#allocation7 + $0x120] ss:$8 sps:$4 sm:$0xff]  }
 0x270   :  { %848 = vmatprep.subr.bf16.mxu0 %v1473_v21 }
 0x271   :  { %1563 = vrsqrt.f32 %v265_v24  ;;  %v1476_v24 = vld [vmem:[#allocation7 + $0x134] ss:$8 sps:$4 sm:$0xff]  }
 0x273   :  { %849 = vmatpush1.bf16.msra.mxu0 %v1471_v23 }
 0x274   :  { %850 = vmatprep.subr.bf16.mxu0 %v1476_v24 }
 0x277   :  { %v1562_v26 = vpop.eup %1561  ;;  %851 = vmatpush1.bf16.msra.mxu0 %v1474_v25 }
 0x278   :  { %v269_v28 = vmul.f32 %v1562_v26, %v249_v56  ;;  %v268_v31 = vmul.f32 %v1562_v26, %v248_v55  ;;  %v1479_v26 = vld [vmem:[#allocation7 + $0x144] ss:$8 sps:$4 sm:$0xff]  }
 0x279   :  { %852 = vmatprep.subr.bf16.mxu0 %v1479_v26 }
 0x27a   :  { %v284_v36 = vmul.f32 %v280_v30, %v269_v28  ;;  %v283_v38 = vmul.f32 %v276_v29, %v268_v31  ;;  %v1482_v28 = vld [vmem:[#allocation7 + $0x154] ss:$8 sps:$4 sm:$0xff]   ;;  %v1483_v31 = vld [vmem:[#allocation7 + $0x160] ss:$8 sps:$4 sm:$0xff]  }
 0x27b   :  { %v1564_v32 = vpop.eup %1563  ;;  %853 = vmatpush1.bf16.msra.mxu0 %v1477_v27 }
 0x27c   :  { %v271_v35 = vmul.f32 %v1564_v32, %v251_v62  ;;  %v270_v37 = vmul.f32 %v1564_v32, %v250_v61  ;;  %v299_v41 = vadd.f32 %v295_v34, %v284_v36  ;;  %v298_v43 = vadd.f32 %v291_v33, %v283_v38  ;;  %854 = vmatprep.subr.bf16.mxu0 %v1482_v28  ;;  %v1488_v32 = vld [vmem:[#allocation7 + $0x174] ss:$8 sps:$4 sm:$0xff]  }
 0x27d   :  { %v1494_v36 = vld [vmem:[#allocation7 + $0x194] ss:$8 sps:$4 sm:$0xff]  }
 0x27e   :  { %v286_v39 = vmul.f32 %v280_v30, %v271_v35  ;;  %v285_v40 = vmul.f32 %v276_v29, %v270_v37  ;;  %v1480_v29 = vld [vmem:[#allocation7 + $0x150] ss:$8 sps:$4 sm:$0xff]   ;;  %v1485_v30 = vld [vmem:[#allocation7 + $0x164] ss:$8 sps:$4 sm:$0xff]   ;;  %v1489_v35 = vld [vmem:[#allocation7 + $0x180] ss:$8 sps:$4 sm:$0xff]  }
 0x27f   :  { %855 = vmatpush1.bf16.msra.mxu0 %v1480_v29  ;;  %v1492_v37 = vld [vmem:[#allocation7 + $0x190] ss:$8 sps:$4 sm:$0xff]  }
 0x280   :  { %v301_v42 = vadd.f32 %v295_v34, %v286_v39  ;;  %v300_v44 = vadd.f32 %v291_v33, %v285_v40  ;;  %856 = vmatprep.subr.bf16.mxu0 %v1485_v30  ;;  %v1486_v33 = vld [vmem:[#allocation7 + $0x170] ss:$8 sps:$4 sm:$0xff]   ;;  %v1491_v34 = vld [vmem:[#allocation7 + $0x184] ss:$8 sps:$4 sm:$0xff]  }
 0x281   :  { %v575_v30 = vld [vmem:[#allocation8 + $0x10] ss:$8 sm:$0x3] }
 0x282   :  { %v303_v45 = vpack.c.bf16 %v301_v42, %v299_v41  ;;  %v302_v46 = vpack.c.bf16 %v300_v44, %v298_v43 }
 0x283   :  { %857 = vmatpush1.bf16.msra.mxu0 %v1483_v31  ;;  %v677_v31 = vrot.slane %v575_v30, %v1816_v20 }
 0x284   :  { %539 = vmatprep.mubr.bf16.mxu1 %v303_v45  ;;  %858 = vmatprep.subr.bf16.mxu0 %v1488_v32  ;;  %v681_v32 = vrot.slane %v575_v30, %v1818_v22 }
 0x285   :  { %540 = vmatmul.mubr.bf16.vlgmr.msra.gmra.mrb[0].mxu1 %v302_v46 }
 0x287   :  { %859 = vmatpush1.bf16.msra.mxu0 %v1486_v33 }
 0x288   :  { %860 = vmatprep.subr.bf16.mxu0 %v1491_v34 }
 0x28b   :  { %861 = vmatpush1.bf16.msra.mxu0 %v1489_v35 }
 0x28c   :  { %862 = vmatprep.subr.bf16.mxu0 %v1494_v36 }
 0x28f   :  { %863 = vmatpush1.bf16.msra.mxu0 %v1492_v37 }
 0x358   :  { %v541_v50 = vpop.f32.mrb[0].mxu1 }
 0x359   :  { %v542_v51 = vadd.f32 %v541_v50, %v340_v48  ;;  %v543_v52 = vpop.f32.mrb[1].mxu1 }
 0x35a   :  { %v544_v53 = vadd.f32 %v543_v52, %v344_v49  ;;  %v545_v54 = vpop.f32.mrb[2].mxu1  ;;  %v1497_v52 = vld [vmem:[#allocation7 + $0x1a4] ss:$8 sps:$4 sm:$0xff]  }
 0x35b   :  { %v554_v55 = vmul.f32 0.70710677, %v542_v51  ;;  %v546_v56 = vadd.f32 %v545_v54, %v340_v48  ;;  %v547_v57 = vpop.f32.mrb[3].mxu1  ;;  %v550_v0 = vmul.f32 0.5, %v542_v51  ;;  %864 = vmatprep.subr.bf16.mxu0 %v1497_v52  ;;  %v1500_v54 = vld [vmem:[#allocation7 + $0x1b4] ss:$8 sps:$4 sm:$0xff]  }
 0x35c   :  { %v555_v58 = vmul.f32 0.70710677, %v544_v53  ;;  %v548_v59 = vadd.f32 %v547_v57, %v344_v49  ;;  %v551_v3 = vmul.f32 0.5, %v544_v53  ;;  %v1495_v53 = vld [vmem:[#allocation7 + $0x1a0] ss:$8 sps:$4 sm:$0xff]  }
 0x35d   :  { %1565 = verf.f32 %v554_v55  ;;  %v556_v60 = vmul.f32 0.70710677, %v546_v56  ;;  %v552_v6 = vmul.f32 0.5, %v546_v56  ;;  %865 = vmatpush1.bf16.msra.mxu0 %v1495_v53  ;;  %v1498_v55 = vld [vmem:[#allocation7 + $0x1b0] ss:$8 sps:$4 sm:$0xff]  }
 0x35e   :  { %1567 = verf.f32 %v555_v58  ;;  %v557_v61 = vmul.f32 0.70710677, %v548_v59  ;;  %v553_v9 = vmul.f32 0.5, %v548_v59  ;;  %866 = vmatprep.subr.bf16.mxu0 %v1500_v54  ;;  %v1503_v56 = vld [vmem:[#allocation7 + $0x1c4] ss:$8 sps:$4 sm:$0xff]  }
 0x35f   :  { %1569 = verf.f32 %v556_v60  ;;  %v1501_v57 = vld [vmem:[#allocation7 + $0x1c0] ss:$8 sps:$4 sm:$0xff]   ;;  %v1506_v58 = vld [vmem:[#allocation7 + $0x1d4] ss:$8 sps:$4 sm:$0xff]   ;;  %v1504_v59 = vld [vmem:[#allocation7 + $0x1d0] ss:$8 sps:$4 sm:$0xff]  }
 0x360   :  { %1571 = verf.f32 %v557_v61  ;;  %v1509_v60 = vld [vmem:[#allocation7 + $0x1e4] ss:$8 sps:$4 sm:$0xff]   ;;  %v1507_v61 = vld [vmem:[#allocation7 + $0x1e0] ss:$8 sps:$4 sm:$0xff]  }
 0x361   :  { %867 = vmatpush1.bf16.msra.mxu0 %v1498_v55 }
 0x362   :  { %868 = vmatprep.subr.bf16.mxu0 %v1503_v56 }
 0x365   :  { %869 = vmatpush1.bf16.msra.mxu0 %v1501_v57 }
 0x366   :  { %870 = vmatprep.subr.bf16.mxu0 %v1506_v58 }
 0x367   :  { %v1566_v62 = vpop.eup %1565 }
 0x368   :  { %v1568_v63 = vpop.eup %1567  ;;  %v562_v1 = vadd.f32 1.0, %v1566_v62  ;;  %v1512_v62 = vld [vmem:[#allocation7 + $0x1f4] ss:$8 sps:$4 sm:$0xff]  }
 0x369   :  { %v1570_v2 = vpop.eup %1569  ;;  %v563_v4 = vadd.f32 1.0, %v1568_v63  ;;  %871 = vmatpush1.bf16.msra.mxu0 %v1504_v59  ;;  %v1510_v63 = vld [vmem:[#allocation7 + $0x1f0] ss:$8 sps:$4 sm:$0xff]  }
 0x36a   :  { %v1572_v5 = vpop.eup %1571  ;;  %v566_v7 = vmul.f32 %v562_v1, %v550_v0  ;;  %v564_v8 = vadd.f32 1.0, %v1570_v2  ;;  %872 = vmatprep.subr.bf16.mxu0 %v1509_v60 }
 0x36b   :  { %v567_v10 = vmul.f32 %v563_v4, %v551_v3  ;;  %v565_v11 = vadd.f32 1.0, %v1572_v5 }
 0x36c   :  { %v568_v12 = vmul.f32 %v564_v8, %v552_v6  ;;  %v571_v6 = vld [vmem:[#allocation8 + $0x2] ss:$8 sm:$0x3] }
 0x36d   :  { %v576_v13 = vadd.f32 %v567_v10, %v566_v7  ;;  %v569_v14 = vmul.f32 %v565_v11, %v553_v9  ;;  %873 = vmatpush1.bf16.msra.mxu0 %v1507_v61  ;;  %v612_v8 = vrot.slane %v571_v6, %v1816_v20  ;;  %v616_v9 = vrot.slane %v571_v6, %v1818_v22  ;;  %v1522_v6 = vld [vmem:[#allocation7 + $0x230] ss:$8 sps:$4 sm:$0xff]  }
 0x36e   :  { %874 = vmatprep.subr.bf16.mxu0 %v1512_v62 }
 0x36f   :  { %577 = vadd.xlane.f32.xlu0 %v576_v13  ;;  %v579_v15 = vadd.f32 %v569_v14, %v568_v12 }
 0x371   :  { %580 = vadd.xlane.f32.xlu1 %v579_v15  ;;  %875 = vmatpush1.bf16.msra.mxu0 %v1510_v63  ;;  %v1513_v63 = vld [vmem:[#allocation7 + $0x200] ss:$8 sps:$4 sm:$0xff]  }
 0x3fc   :  { %v578_v38 = vpop.xlane.xlu0 %577 }
 0x3fd   :  { %v582_v39 = vmul.f32 0.00390625, %v578_v38 }
 0x3fe   :  { %v581_v40 = vpop.xlane.xlu1 %580 }
 0x3ff   :  { %v584_v41 = vsub.f32 %v566_v7, %v582_v39  ;;  %v585_v42 = vsub.f32 %v567_v10, %v582_v39  ;;  %v583_v43 = vmul.f32 0.00390625, %v581_v40  ;;  %v573_v7 = vld [vmem:[#allocation8 + $0x5] ss:$8 sm:$0x3] }
 0x400   :  { %v631_v15 = vrot.slane %v573_v7, %v1818_v22 }
 0x401   :  { %v586_v44 = vsub.f32 %v568_v12, %v583_v43  ;;  %v587_v45 = vsub.f32 %v569_v14, %v583_v43  ;;  %v588_v46 = vmul.f32 %v584_v41, %v584_v41  ;;  %v589_v47 = vmul.f32 %v585_v42, %v585_v42 }
 0x402   :  { %v627_v14 = vrot.slane %v573_v7, %v1816_v20  ;;  %v1527_v7 = vld [vmem:[#allocation7 + $0x244] ss:$8 sps:$4 sm:$0xff]  }
 0x403   :  { %v592_v48 = vadd.f32 %v589_v47, %v588_v46  ;;  %v590_v49 = vmul.f32 %v586_v44, %v586_v44  ;;  %v591_v50 = vmul.f32 %v587_v45, %v587_v45 }
 0x405   :  { %593 = vadd.xlane.f32.xlu0 %v592_v48  ;;  %v595_v51 = vadd.f32 %v591_v50, %v590_v49 }
 0x407   :  { %596 = vadd.xlane.f32.xlu1 %v595_v51 }
 0x492   :  { %v594_v0 = vpop.xlane.xlu0 %593 }
 0x493   :  { %v598_v1 = vmul.f32 0.00390625, %v594_v0  ;;  %v1515_v0 = vld [vmem:[#allocation7 + $0x204] ss:$8 sps:$4 sm:$0xff]  }
 0x494   :  { %v597_v2 = vpop.xlane.xlu1 %596  ;;  %1181 = vmatprep.subr.bf16.mxu1 %v1515_v0 }
 0x495   :  { %v600_v3 = vadd.f32 1e-05, %v598_v1  ;;  %v599_v4 = vmul.f32 0.00390625, %v597_v2  ;;  %v1518_v1 = vld [vmem:[#allocation7 + $0x214] ss:$8 sps:$4 sm:$0xff]   ;;  %1182 = vmatpush1.bf16.msra.mxu1 %v1513_v63 }
 0x496   :  { %v1516_v2 = vld [vmem:[#allocation7 + $0x210] ss:$8 sps:$4 sm:$0xff]   ;;  %1183 = vmatprep.subr.bf16.mxu1 %v1518_v1 }
 0x497   :  { %1573 = vrsqrt.f32 %v600_v3  ;;  %v601_v5 = vadd.f32 1e-05, %v599_v4  ;;  %v1521_v3 = vld [vmem:[#allocation7 + $0x224] ss:$8 sps:$4 sm:$0xff]   ;;  %v1519_v4 = vld [vmem:[#allocation7 + $0x220] ss:$8 sps:$4 sm:$0xff]  }
 0x499   :  { %1575 = vrsqrt.f32 %v601_v5  ;;  %1184 = vmatpush1.bf16.msra.mxu1 %v1516_v2  ;;  %v1524_v5 = vld [vmem:[#allocation7 + $0x234] ss:$8 sps:$4 sm:$0xff]  }
 0x49a   :  { %1185 = vmatprep.subr.bf16.mxu1 %v1521_v3 }
 0x49d   :  { %1186 = vmatpush1.bf16.msra.mxu1 %v1519_v4 }
 0x49e   :  { %1187 = vmatprep.subr.bf16.mxu1 %v1524_v5 }
 0x4a1   :  { %v1574_v10 = vpop.eup %1573  ;;  %1188 = vmatpush1.bf16.msra.mxu1 %v1522_v6 }
 0x4a2   :  { %v604_v11 = vmul.f32 %v1574_v10, %v584_v41  ;;  %v605_v12 = vmul.f32 %v1574_v10, %v585_v42  ;;  %1189 = vmatprep.subr.bf16.mxu1 %v1527_v7  ;;  %v1528_v10 = vld [vmem:[#allocation7 + $0x250] ss:$8 sps:$4 sm:$0xff]  }
 0x4a3   :  { %v1576_v13 = vpop.eup %1575 }
 0x4a4   :  { %v606_v16 = vmul.f32 %v1576_v13, %v586_v44  ;;  %v607_v17 = vmul.f32 %v1576_v13, %v587_v45  ;;  %v620_v18 = vmul.f32 %v616_v9, %v605_v12  ;;  %v619_v19 = vmul.f32 %v612_v8, %v604_v11  ;;  %v1533_v11 = vld [vmem:[#allocation7 + $0x264] ss:$8 sps:$4 sm:$0xff]   ;;  %v1531_v12 = vld [vmem:[#allocation7 + $0x260] ss:$8 sps:$4 sm:$0xff]   ;;  %v1536_v13 = vld [vmem:[#allocation7 + $0x274] ss:$8 sps:$4 sm:$0xff]  }
 0x4a6   :  { %v622_v21 = vmul.f32 %v616_v9, %v607_v17  ;;  %v621_v23 = vmul.f32 %v612_v8, %v606_v16  ;;  %v635_v24 = vadd.f32 %v631_v15, %v620_v18  ;;  %v634_v26 = vadd.f32 %v627_v14, %v619_v19  ;;  %v1525_v8 = vld [vmem:[#allocation7 + $0x240] ss:$8 sps:$4 sm:$0xff]   ;;  %v1530_v9 = vld [vmem:[#allocation7 + $0x254] ss:$8 sps:$4 sm:$0xff]   ;;  %v1540_v18 = vld [vmem:[#allocation7 + $0x290] ss:$8 sps:$4 sm:$0xff]  }
 0x4a7   :  { %1190 = vmatpush1.bf16.msra.mxu1 %v1525_v8  ;;  %v1537_v16 = vld [vmem:[#allocation7 + $0x280] ss:$8 sps:$4 sm:$0xff]   ;;  %v1542_v17 = vld [vmem:[#allocation7 + $0x294] ss:$8 sps:$4 sm:$0xff]  }
 0x4a8   :  { %v637_v25 = vadd.f32 %v631_v15, %v622_v21  ;;  %v636_v27 = vadd.f32 %v627_v14, %v621_v23  ;;  %1191 = vmatprep.subr.bf16.mxu1 %v1530_v9  ;;  %v1534_v14 = vld [vmem:[#allocation7 + $0x270] ss:$8 sps:$4 sm:$0xff]   ;;  %v1539_v15 = vld [vmem:[#allocation7 + $0x284] ss:$8 sps:$4 sm:$0xff]  }
 0x4aa   :  { %v639_v28 = vpack.c.bf16 %v637_v25, %v635_v24  ;;  %v638_v29 = vpack.c.bf16 %v636_v27, %v634_v26 }
 0x4ab   :  { %1192 = vmatpush1.bf16.msra.mxu1 %v1528_v10 }
 0x4ac   :  { %876 = vmatprep.mubr.bf16.mxu0 %v639_v28  ;;  %1193 = vmatprep.subr.bf16.mxu1 %v1533_v11  ;;  %v912_v11 = vld [vmem:[#allocation8 + $0x11] ss:$8 sm:$0x3] }
 0x4ad   :  { %877 = vmatmul.mubr.bf16.vlgmr.msra.gmra.mrb[4].mxu0 %v638_v29 }
 0x4af   :  { %1194 = vmatpush1.bf16.msra.mxu1 %v1531_v12  ;;  %v1014_v12 = vrot.slane %v912_v11, %v1816_v20 }
 0x4b0   :  { %1195 = vmatprep.subr.bf16.mxu1 %v1536_v13  ;;  %v1018_v13 = vrot.slane %v912_v11, %v1818_v22 }
 0x4b3   :  { %1196 = vmatpush1.bf16.msra.mxu1 %v1534_v14 }
 0x4b4   :  { %1197 = vmatprep.subr.bf16.mxu1 %v1539_v15 }
 0x4b7   :  { %1198 = vmatpush1.bf16.msra.mxu1 %v1537_v16 }
 0x4b8   :  { %1199 = vmatprep.subr.bf16.mxu1 %v1542_v17 }
 0x4bb   :  { %1200 = vmatpush1.bf16.msra.mxu1 %v1540_v18 }
 0x580   :  { %v878_v33 = vpop.f32.mrb[4].mxu0 }
 0x581   :  { %v879_v34 = vadd.f32 %v878_v33, %v677_v31  ;;  %v880_v35 = vpop.f32.mrb[5].mxu0 }
 0x582   :  { %v881_v36 = vadd.f32 %v880_v35, %v681_v32  ;;  %v882_v37 = vpop.f32.mrb[6].mxu0  ;;  %v1545_v35 = vld [vmem:[#allocation7 + $0x2a4] ss:$8 sps:$4 sm:$0xff]  }
 0x583   :  { %v891_v38 = vmul.f32 0.70710677, %v879_v34  ;;  %v883_v39 = vadd.f32 %v882_v37, %v677_v31  ;;  %v884_v40 = vpop.f32.mrb[7].mxu0  ;;  %v887_v47 = vmul.f32 0.5, %v879_v34  ;;  %1201 = vmatprep.subr.bf16.mxu1 %v1545_v35  ;;  %v1548_v37 = vld [vmem:[#allocation7 + $0x2b4] ss:$8 sps:$4 sm:$0xff]  }
 0x584   :  { %v892_v41 = vmul.f32 0.70710677, %v881_v36  ;;  %v885_v42 = vadd.f32 %v884_v40, %v681_v32  ;;  %v888_v50 = vmul.f32 0.5, %v881_v36  ;;  %v1543_v36 = vld [vmem:[#allocation7 + $0x2a0] ss:$8 sps:$4 sm:$0xff]  }
 0x585   :  { %1577 = verf.f32 %v891_v38  ;;  %v893_v43 = vmul.f32 0.70710677, %v883_v39  ;;  %v889_v53 = vmul.f32 0.5, %v883_v39  ;;  %1202 = vmatpush1.bf16.msra.mxu1 %v1543_v36  ;;  %v1546_v38 = vld [vmem:[#allocation7 + $0x2b0] ss:$8 sps:$4 sm:$0xff]  }
 0x586   :  { %1579 = verf.f32 %v892_v41  ;;  %v894_v44 = vmul.f32 0.70710677, %v885_v42  ;;  %v890_v56 = vmul.f32 0.5, %v885_v42  ;;  %1203 = vmatprep.subr.bf16.mxu1 %v1548_v37  ;;  %v1551_v39 = vld [vmem:[#allocation7 + $0x2c4] ss:$8 sps:$4 sm:$0xff]  }
 0x587   :  { %1581 = verf.f32 %v893_v43  ;;  %v1549_v40 = vld [vmem:[#allocation7 + $0x2c0] ss:$8 sps:$4 sm:$0xff]   ;;  %v1554_v41 = vld [vmem:[#allocation7 + $0x2d4] ss:$8 sps:$4 sm:$0xff]   ;;  %v1552_v42 = vld [vmem:[#allocation7 + $0x2d0] ss:$8 sps:$4 sm:$0xff]  }
 0x588   :  { %1583 = verf.f32 %v894_v44  ;;  %v1557_v43 = vld [vmem:[#allocation7 + $0x2e4] ss:$8 sps:$4 sm:$0xff]   ;;  %v1555_v44 = vld [vmem:[#allocation7 + $0x2e0] ss:$8 sps:$4 sm:$0xff]  }
 0x589   :  { %1204 = vmatpush1.bf16.msra.mxu1 %v1546_v38 }
 0x58a   :  { %1205 = vmatprep.subr.bf16.mxu1 %v1551_v39 }
 0x58d   :  { %1206 = vmatpush1.bf16.msra.mxu1 %v1549_v40 }
 0x58e   :  { %1207 = vmatprep.subr.bf16.mxu1 %v1554_v41 }
 0x58f   :  { %v1578_v45 = vpop.eup %1577 }
 0x590   :  { %v1580_v46 = vpop.eup %1579  ;;  %v899_v48 = vadd.f32 1.0, %v1578_v45  ;;  %v1560_v45 = vld [vmem:[#allocation7 + $0x2f4] ss:$8 sps:$4 sm:$0xff]  }
 0x591   :  { %v1582_v49 = vpop.eup %1581  ;;  %v900_v51 = vadd.f32 1.0, %v1580_v46  ;;  %1208 = vmatpush1.bf16.msra.mxu1 %v1552_v42  ;;  %v1558_v46 = vld [vmem:[#allocation7 + $0x2f0] ss:$8 sps:$4 sm:$0xff]  }
 0x592   :  { %v1584_v52 = vpop.eup %1583  ;;  %v903_v54 = vmul.f32 %v899_v48, %v887_v47  ;;  %v901_v55 = vadd.f32 1.0, %v1582_v49  ;;  %1209 = vmatprep.subr.bf16.mxu1 %v1557_v43 }
 0x593   :  { %v904_v57 = vmul.f32 %v900_v51, %v888_v50  ;;  %v902_v58 = vadd.f32 1.0, %v1584_v52 }
 0x594   :  { %v905_v59 = vmul.f32 %v901_v55, %v889_v53  ;;  %v908_v53 = vld [vmem:[#allocation8 + $0x3] ss:$8 sm:$0x3] }
 0x595   :  { %v913_v60 = vadd.f32 %v904_v57, %v903_v54  ;;  %v906_v61 = vmul.f32 %v902_v58, %v890_v56  ;;  %1210 = vmatpush1.bf16.msra.mxu1 %v1555_v44  ;;  %v949_v55 = vrot.slane %v908_v53, %v1816_v20  ;;  %v953_v56 = vrot.slane %v908_v53, %v1818_v22 }
 0x596   :  { %1211 = vmatprep.subr.bf16.mxu1 %v1560_v45 }
 0x597   :  { %914 = vadd.xlane.f32.xlu0 %v913_v60  ;;  %v916_v62 = vadd.f32 %v906_v61, %v905_v59 }
 0x599   :  { %917 = vadd.xlane.f32.xlu1 %v916_v62  ;;  %1212 = vmatpush1.bf16.msra.mxu1 %v1558_v46 }
 0x624   :  { %v915_v19 = vpop.xlane.xlu0 %914 }
 0x625   :  { %v919_v21 = vmul.f32 0.00390625, %v915_v19 }
 0x626   :  { %v918_v23 = vpop.xlane.xlu1 %917 }
 0x627   :  { %v921_v24 = vsub.f32 %v903_v54, %v919_v21  ;;  %v922_v25 = vsub.f32 %v904_v57, %v919_v21  ;;  %v920_v26 = vmul.f32 0.00390625, %v918_v23  ;;  %v910_v54 = vld [vmem:[#allocation8 + $0x6] ss:$8 sm:$0x3] }
 0x628   :  { %v968_v62 = vrot.slane %v910_v54, %v1818_v22 }
 0x629   :  { %v923_v27 = vsub.f32 %v905_v59, %v920_v26  ;;  %v924_v28 = vsub.f32 %v906_v61, %v920_v26  ;;  %v925_v29 = vmul.f32 %v921_v24, %v921_v24  ;;  %v926_v30 = vmul.f32 %v922_v25, %v922_v25 }
 0x62a   :  { %v964_v61 = vrot.slane %v910_v54, %v1816_v20 }
 0x62b   :  { %v929_v31 = vadd.f32 %v926_v30, %v925_v29  ;;  %v927_v32 = vmul.f32 %v923_v27, %v923_v27  ;;  %v928_v33 = vmul.f32 %v924_v28, %v924_v28 }
 0x62d   :  { %930 = vadd.xlane.f32.xlu0 %v929_v31  ;;  %v932_v34 = vadd.f32 %v928_v33, %v927_v32 }
 0x62f   :  { %933 = vadd.xlane.f32.xlu1 %v932_v34 }
 0x6ba   :  { %v931_v47 = vpop.xlane.xlu0 %930 }
 0x6bb   :  { %v935_v48 = vmul.f32 0.00390625, %v931_v47 }
 0x6bc   :  { %v934_v49 = vpop.xlane.xlu1 %933 }
 0x6bd   :  { %v937_v50 = vadd.f32 1e-05, %v935_v48  ;;  %v936_v51 = vmul.f32 0.00390625, %v934_v49 }
 0x6bf   :  { %1585 = vrsqrt.f32 %v937_v50  ;;  %v938_v52 = vadd.f32 1e-05, %v936_v51 }
 0x6c1   :  { %1587 = vrsqrt.f32 %v938_v52 }
 0x6c9   :  { %v1586_v57 = vpop.eup %1585 }
 0x6ca   :  { %v941_v58 = vmul.f32 %v1586_v57, %v921_v24  ;;  %v942_v59 = vmul.f32 %v1586_v57, %v922_v25 }
 0x6cb   :  { %v1588_v60 = vpop.eup %1587 }
 0x6cc   :  { %v943_v63 = vmul.f32 %v1588_v60, %v923_v27  ;;  %v944_v0 = vmul.f32 %v1588_v60, %v924_v28  ;;  %v957_v1 = vmul.f32 %v953_v56, %v942_v59  ;;  %v956_v2 = vmul.f32 %v949_v55, %v941_v58 }
 0x6ce   :  { %v959_v3 = vmul.f32 %v953_v56, %v944_v0  ;;  %v958_v4 = vmul.f32 %v949_v55, %v943_v63  ;;  %v972_v5 = vadd.f32 %v968_v62, %v957_v1  ;;  %v971_v7 = vadd.f32 %v964_v61, %v956_v2 }
 0x6d0   :  { %v974_v6 = vadd.f32 %v968_v62, %v959_v3  ;;  %v973_v8 = vadd.f32 %v964_v61, %v958_v4 }
 0x6d2   :  { %v976_v9 = vpack.c.bf16 %v974_v6, %v972_v5  ;;  %v975_v10 = vpack.c.bf16 %v973_v8, %v971_v7 }
 0x6d4   :  { %1213 = vmatprep.mubr.bf16.mxu1 %v976_v9 }
 0x6d5   :  { %1214 = vmatmul.mubr.bf16.vlgmr.msra.gmra.mrb[4].mxu1 %v975_v10 }
 0x7a8   :  { %v1215_v14 = vpop.f32.mrb[4].mxu1 }
 0x7a9   :  { %v1216_v15 = vadd.f32 %v1215_v14, %v1014_v12  ;;  %v1217_v16 = vpop.f32.mrb[5].mxu1 }
 0x7aa   :  { %v1218_v17 = vadd.f32 %v1217_v16, %v1018_v13  ;;  %v1219_v18 = vpop.f32.mrb[6].mxu1 }
 0x7ab   :  { %v1228_v19 = vmul.f32 0.70710677, %v1216_v15  ;;  %v1220_v21 = vadd.f32 %v1219_v18, %v1014_v12  ;;  %v1221_v23 = vpop.f32.mrb[7].mxu1  ;;  %v1224_v29 = vmul.f32 0.5, %v1216_v15 }
 0x7ac   :  { %v1229_v24 = vmul.f32 0.70710677, %v1218_v17  ;;  %v1222_v25 = vadd.f32 %v1221_v23, %v1018_v13  ;;  %v1225_v31 = vmul.f32 0.5, %v1218_v17 }
 0x7ad   :  { %1589 = verf.f32 %v1228_v19  ;;  %v1230_v26 = vmul.f32 0.70710677, %v1220_v21  ;;  %v1226_v35 = vmul.f32 0.5, %v1220_v21 }
 0x7ae   :  { %1591 = verf.f32 %v1229_v24  ;;  %v1231_v27 = vmul.f32 0.70710677, %v1222_v25  ;;  %v1227_v38 = vmul.f32 0.5, %v1222_v25 }
 0x7af   :  { %1593 = verf.f32 %v1230_v26 }
 0x7b0   :  { %1595 = verf.f32 %v1231_v27 }
 0x7b7   :  { %v1590_v28 = vpop.eup %1589 }
 0x7b8   :  { %v1592_v20 = vpop.eup %1591  ;;  %v1236_v22 = vadd.f32 1.0, %v1590_v28 }
 0x7b9   :  { %v1594_v30 = vpop.eup %1593  ;;  %v1237_v32 = vadd.f32 1.0, %v1592_v20 }
 0x7ba   :  { %v1596_v33 = vpop.eup %1595  ;;  %v1240_v34 = vmul.f32 %v1236_v22, %v1224_v29  ;;  %v1238_v36 = vadd.f32 1.0, %v1594_v30 }
 0x7bb   :  { %v1241_v37 = vmul.f32 %v1237_v32, %v1225_v31  ;;  %v1239_v39 = vadd.f32 1.0, %v1596_v33 }
 0x7bc   :  { %1244 = vst [vmem:[#allocation10] sm:$0xff] %v1240_v34  ;;  %v1242_v40 = vmul.f32 %v1238_v36, %v1226_v35 }
 0x7bd   :  { %1245 = vst [vmem:[#allocation10 + $0x8] sm:$0xff] %v1241_v37  ;;  %v1243_v41 = vmul.f32 %v1239_v39, %v1227_v38 }
 0x7be   :  { %1246 = vst [vmem:[#allocation10 + $0x10] sm:$0xff] %v1242_v40 }
 0x7bf   :  { %1247 = vst [vmem:[#allocation10 + $0x18] sm:$0xff] %v1243_v41 }
 0x7c0   :  { %1696 = shalt.err (!%p1693_p8)
}
 0x7c1   :  { %s1697_s17 = scalar_lea.hbm %s1859_s4, 512 }
 0x7c2   :  { %p1698_p9 = scmp.ne.s32.totalorder %s1859_s4, %s1697_s17  ;;  %p1701_p10 = scmp.lt.u32.totalorder %s1697_s17, %s1859_s4 }
 0x7c4   :  { %p1703_p11 = pnand %p1701_p10, %p1698_p9 }
 0x7c6   :  { %1706 = shalt.err (!%p1703_p11)
}
 0x7c7   :  { %1259 = dma.vmem_to_hbm [thread:$0]  %s1254_s13, 512, %s1859_s4, [#allocation4], %s1723_s2, %s1723_s2, %s1724_s25  }
 0x7c8   :  { %1713 = dma.done.wait [#allocation4], 512  }
 0x7c9   :  { %1714 = vsyncadd [#allocation4], 4294966784 }
 0x7ca   :  { %1263 = vsyncpa [#allocation3], 1 }
 0x7cb   :  { %1264 = vsyncpa [#allocation6], 1 }
 0x7cc   :  { %1265 = vsyncpa [#allocation9], 1 }
 0x7cd   :  { %1266 = vsyncpa [#allocation4], 1 }

</bundles_post_ra>
